<compile_context>
chip_gen: v7x
topology: tpu7x:2x2x1
jax: 0.10.0
libtpu: 0.0.40
codegen_flags: <defaults>
</compile_context>

<pallas_src>
import jax
import jax.numpy as jnp
from jax import lax
from jax.experimental import pallas as pl
from jax.experimental.pallas import tpu as pltpu

LANE = 128
SUBLANE = 8
ROW_CHUNK = 256        # in-kernel row sub-block (keeps intermediates vreg-sized)


def _round_up(n, m):
    return ((n + m - 1) // m) * m


# --------------------------------------------------------------------------
# Kernel: one batch tile per grid step; all layers fused; rows sub-blocked.
# --------------------------------------------------------------------------
def decoder_kernel(x_ref, w1_ref, b1_ref, w2_ref, b2_ref, w3_ref, b3_ref, o_ref):
    TB = x_ref.shape[0]
    RB = TB if TB <= ROW_CHUNK else ROW_CHUNK          # wrapper guarantees TB % RB == 0
    n_chunks = TB // RB

    # Hoisted weight/bias reads and the b1 broadcast (JAX does not CSE
    # broadcast_in_dim; keep them out of the row loop).
    w1 = w1_ref[...]                                   # (latent, HP)  f32
    w2 = w2_ref[...]                                   # (HP, HP)      bf16
    b2 = b2_ref[...]                                   # (1, HP)       f32
    w3 = w3_ref[...]                                   # (HP, out_dim) bf16
    b3 = b3_ref[...]                                   # (1, out_dim)  f32
    h1_init = jnp.broadcast_to(b1_ref[...], (RB, w1.shape[1]))

    def chunk(x):
        # fc1: K = latent_dim is tiny -> rank-1 broadcast FMAs on the VPU.
        h1 = h1_init
        for k in range(w1.shape[0]):                   # static tiny loop
            h1 = h1 + x[:, k:k + 1] * w1[k:k + 1, :]
        h1 = jnp.maximum(h1, 0.0)                      # ReLU, f32

        # fc2: bf16-input MXU matmul, f32 accumulation; bias/ReLU in f32.
        h2 = jnp.dot(h1.astype(w2.dtype), w2, preferred_element_type=jnp.float32)
        h2 = jnp.maximum(h2 + b2, 0.0)

        # fc3: bf16-input MXU matmul, f32 accumulation; sigmoid in f32 (EUP).
        logits = jnp.dot(h2.astype(w3.dtype), w3, preferred_element_type=jnp.float32)
        return jax.nn.sigmoid(logits + b3).astype(o_ref.dtype)

    if n_chunks == 1:
        o_ref[...] = chunk(x_ref[...])
    else:
        def body(c, carry):
            r0 = pl.multiple_of(c * RB, RB)
            o_ref[pl.ds(r0, RB), :] = chunk(x_ref[pl.ds(r0, RB), :])
            return carry
        lax.fori_loop(0, n_chunks, body, 0, unroll=True)


# --------------------------------------------------------------------------
# Parameter prep: pad internal feature dims to 128 lanes, cast matmul weights
# to bf16.  The OUTPUT feature dim is NOT padded (kernel writes out_dim-wide).
# --------------------------------------------------------------------------
def prepare_decoder_params(params, mm_dtype=jnp.bfloat16):
    w1, b1 = params["w1"], params["b1"]
    w2, b2 = params["w2"], params["b2"]
    w3, b3 = params["w3"], params["b3"]
    latent, hidden = w1.shape
    out_dim = w3.shape[1]
    HP = _round_up(hidden, LANE)

    def pad2(a, rows, cols, dt):
        z = jnp.zeros((rows, cols), dt)
        return z.at[: a.shape[0], : a.shape[1]].set(a.astype(dt))

    return {
        "w1": pad2(w1, latent, HP, jnp.float32),   # fc1 stays f32 (VPU path)
        "b1": pad2(b1, 1, HP, jnp.float32),
        "w2": pad2(w2, HP, HP, mm_dtype),
        "b2": pad2(b2, 1, HP, jnp.float32),
        "w3": pad2(w3, HP, out_dim, mm_dtype),     # rows padded only
        "b3": b3.astype(jnp.float32).reshape(1, out_dim),
    }


def _choose_tile(batch, tile_b, min_steps):
    """Batch tile: sublane-aligned, >= min_steps grid steps for large B,
    and a multiple of ROW_CHUNK when it exceeds ROW_CHUNK (in-kernel loop)."""
    b8 = _round_up(max(batch, 1), SUBLANE)
    target = _round_up(-(-b8 // min_steps), SUBLANE)   # ceil(b8/min_steps), aligned
    tb = min(_round_up(tile_b, SUBLANE), target)
    if tb > ROW_CHUNK:
        tb = _round_up(tb, ROW_CHUNK)
    return max(tb, SUBLANE)


# --------------------------------------------------------------------------
# Wrapper: batch grid, weight-resident BlockSpecs, out_dim-wide output.
# --------------------------------------------------------------------------
def decoder_forward(x, padded_params, *, tile_b=2048, min_steps=8):
    w1, b1 = padded_params["w1"], padded_params["b1"]
    w2, b2 = padded_params["w2"], padded_params["b2"]
    w3, b3 = padded_params["w3"], padded_params["b3"]

    B, latent = x.shape
    HP = w2.shape[1]
    out_dim = w3.shape[1]

    TB = _choose_tile(B, tile_b, min_steps)
    B_pad = _round_up(B, TB)
    if B_pad != B:
        x = jnp.pad(x, ((0, B_pad - B), (0, 0)))

    grid = (B_pad // TB,)

    # Explicit VMEM budget: x block is lane-padded to 128 f32 in VMEM, output
    # block to out_dim (lane-padded) f32; both double-buffered.  Weights are
    # small and resident.  4x headroom, clamped to [16 MiB, 32 MiB] so it is
    # safe on every generation (v7x: 64 MiB physical / 32 MiB default scoped).
    rb = TB if TB <= ROW_CHUNK else ROW_CHUNK
    weight_bytes = sum(int(a.size) * a.dtype.itemsize
                       for a in (w1, b1, w2, b2, w3, b3))
    est = (2 * TB * _round_up(latent, LANE) * 4
           + 2 * TB * _round_up(out_dim, LANE) * 4
           + 2 * weight_bytes
           + 6 * rb * HP * 4)                          # h1/h2/logits intermediates
    vmem_limit = int(min(max(4 * est, 16 * 2 ** 20), 32 * 2 ** 20))

    # Weights/biases: full-array blocks whose index_map is constant across the
    # grid -> DMA'd once and kept VMEM-resident for every batch tile.
    resident = lambda a: pl.BlockSpec(a.shape, lambda i: (0, 0))

    out = pl.pallas_call(
        decoder_kernel,
        out_shape=jax.ShapeDtypeStruct((B_pad, out_dim), jnp.float32),
        grid=grid,
        in_specs=[
            pl.BlockSpec((TB, latent), lambda i: (i, 0)),  # x tile walks batch
            resident(w1), resident(b1),
            resident(w2), resident(b2),
            resident(w3), resident(b3),
        ],
        out_specs=pl.BlockSpec((TB, out_dim), lambda i: (i, 0)),
        compiler_params=pltpu.CompilerParams(
            dimension_semantics=("parallel",),   # megacore sharding on v7x
            vmem_limit_bytes=vmem_limit,
        ),
    )(x, w1, b1, w2, b2, w3, b3)

    if B_pad != B:
        out = out[:B]          # narrow row-only slice (no column slice copy)
    return out


# --------------------------------------------------------------------------
# Deterministic init mimicking PyTorch nn.Linear (uniform +/- 1/sqrt(fan_in)).
# Weights stored as (in_features, out_features).
# --------------------------------------------------------------------------
def init_decoder_params(key, latent_dim, hidden_dim, output_dim):
    ks = jax.random.split(key, 6)

    def linear(kw, kb, fan_in, fan_out):
        bound = 1.0 / jnp.sqrt(fan_in)
        w = jax.random.uniform(kw, (fan_in, fan_out), jnp.float32, -bound, bound)
        b = jax.random.uniform(kb, (1, fan_out), jnp.float32, -bound, bound)
        return w, b

    w1, b1 = linear(ks[0], ks[1], latent_dim, hidden_dim)
    w2, b2 = linear(ks[2], ks[3], hidden_dim, hidden_dim)
    w3, b3 = linear(ks[4], ks[5], hidden_dim, output_dim)
    return {"w1": w1, "b1": b1, "w2": w2, "b2": b2, "w3": w3, "b3": b3}


if __name__ == "__main__":
    latent_dim = 2
    hidden_dim = 32
    output_dim = 64
    batch = 8

    key = jax.random.PRNGKey(0)
    k_params, k_x, k_x2, k_x3 = jax.random.split(key, 4)
    params = init_decoder_params(k_params, latent_dim, hidden_dim, output_dim)
    padded = prepare_decoder_params(params)

    # Reference that mirrors the kernel math exactly
    # (fc1 in f32, fc2/fc3 as bf16-input / f32-accumulate matmuls).
    def ref_fwd(xx):
        h1 = jnp.maximum(xx @ params["w1"] + params["b1"], 0.0)
        h2 = jnp.dot(h1.astype(jnp.bfloat16),
                     params["w2"].astype(jnp.bfloat16),
                     preferred_element_type=jnp.float32) + params["b2"]
        h2 = jnp.maximum(h2, 0.0)
        logits = jnp.dot(h2.astype(jnp.bfloat16),
                         params["w3"].astype(jnp.bfloat16),
                         preferred_element_type=jnp.float32) + params["b3"]
        return jax.nn.sigmoid(logits)

    # Small batch (single grid step, no padding / slicing at all).
    x = jax.random.normal(k_x, (batch, latent_dim), dtype=jnp.float32)
    out = decoder_forward(x, padded)
    jax.block_until_ready(out)
    assert out.shape == (batch, output_dim)
    assert jnp.allclose(out, ref_fwd(x), atol=1e-4, rtol=1e-4), "mismatch vs bf16 ref"

    # Full-f32 module semantics preserved within bf16 weight-rounding tolerance.
    h1 = jnp.maximum(x @ params["w1"] + params["b1"], 0.0)
    h2 = jnp.maximum(h1 @ params["w2"] + params["b2"], 0.0)
    ref_f32 = jax.nn.sigmoid(h2 @ params["w3"] + params["b3"])
    assert jnp.allclose(out, ref_f32, atol=5e-2), "mismatch vs f32 reference"

    # Grid > 1 with a batch that is not a multiple of the tile (row pad + slice).
    x2 = jax.random.normal(k_x2, (1000, latent_dim), dtype=jnp.float32)
    out2 = decoder_forward(x2, padded)
    jax.block_until_ready(out2)
    assert out2.shape == (1000, output_dim)
    assert jnp.allclose(out2, ref_fwd(x2), atol=1e-4, rtol=1e-4), "mismatch (grid>1)"

    # Larger batch that exercises the in-kernel row sub-block loop (TB > 256).
    x3 = jax.random.normal(k_x3, (4096, latent_dim), dtype=jnp.float32)
    out3 = decoder_forward(x3, padded)
    jax.block_until_ready(out3)
    assert out3.shape == (4096, output_dim)
    assert jnp.allclose(out3, ref_fwd(x3), atol=1e-4, rtol=1e-4), "mismatch (subblock)"

    print("KERNEL_OK")
</pallas_src>

<mosaic_0001>
module attributes {stable_mosaic.version = 11 : i64} {
  func.func @decoder_kernel(%arg0: i32, %arg1: memref<8x2xf32, #tpu.memory_space<vmem>>, %arg2: memref<2x128xf32, #tpu.memory_space<vmem>>, %arg3: memref<1x128xf32, #tpu.memory_space<vmem>>, %arg4: memref<128x128xbf16, #tpu.memory_space<vmem>>, %arg5: memref<1x128xf32, #tpu.memory_space<vmem>>, %arg6: memref<128x64xbf16, #tpu.memory_space<vmem>>, %arg7: memref<1x64xf32, #tpu.memory_space<vmem>>, %arg8: memref<8x64xf32, #tpu.memory_space<vmem>>) attributes {dimension_semantics = [#tpu.dimension_semantics<parallel>], iteration_bounds = array<i64: 1>, scalar_prefetch = 0 : i64, scratch_operands = 0 : i64, tpu.core_type = #tpu.core_type<tc>, window_params = [{transform_indices = @transform_0, window_bounds = array<i64: 8, 2>}, {pipeline_mode = #tpu.pipeline_mode<synchronous>, transform_indices = @transform_1, window_bounds = array<i64: 2, 128>}, {pipeline_mode = #tpu.pipeline_mode<synchronous>, transform_indices = @transform_2, window_bounds = array<i64: 1, 128>}, {pipeline_mode = #tpu.pipeline_mode<synchronous>, transform_indices = @transform_3, window_bounds = array<i64: 128, 128>}, {pipeline_mode = #tpu.pipeline_mode<synchronous>, transform_indices = @transform_4, window_bounds = array<i64: 1, 128>}, {pipeline_mode = #tpu.pipeline_mode<synchronous>, transform_indices = @transform_5, window_bounds = array<i64: 128, 64>}, {pipeline_mode = #tpu.pipeline_mode<synchronous>, transform_indices = @transform_6, window_bounds = array<i64: 1, 64>}, {transform_indices = @transform_7, window_bounds = array<i64: 8, 64>}]} {
    %c0 = arith.constant 0 : index
    %c0_0 = arith.constant 0 : index
    %0 = vector.load %arg2[%c0, %c0_0] : memref<2x128xf32, #tpu.memory_space<vmem>>, vector<2x128xf32>
    %c0_1 = arith.constant 0 : index
    %c0_2 = arith.constant 0 : index
    %1 = vector.load %arg4[%c0_1, %c0_2] : memref<128x128xbf16, #tpu.memory_space<vmem>>, vector<128x128xbf16>
    %c0_3 = arith.constant 0 : index
    %c0_4 = arith.constant 0 : index
    %2 = vector.load %arg5[%c0_3, %c0_4] : memref<1x128xf32, #tpu.memory_space<vmem>>, vector<1x128xf32>
    %c0_5 = arith.constant 0 : index
    %c0_6 = arith.constant 0 : index
    %3 = vector.load %arg6[%c0_5, %c0_6] : memref<128x64xbf16, #tpu.memory_space<vmem>>, vector<128x64xbf16>
    %c0_7 = arith.constant 0 : index
    %c0_8 = arith.constant 0 : index
    %4 = vector.load %arg7[%c0_7, %c0_8] : memref<1x64xf32, #tpu.memory_space<vmem>>, vector<1x64xf32>
    %c0_9 = arith.constant 0 : index
    %c0_10 = arith.constant 0 : index
    %5 = vector.load %arg3[%c0_9, %c0_10] : memref<1x128xf32, #tpu.memory_space<vmem>>, vector<1x128xf32>
    %6 = vector.shape_cast %5 : vector<1x128xf32> to vector<1x128xf32>
    %7 = vector.broadcast %6 : vector<1x128xf32> to vector<8x128xf32>
    %c0_11 = arith.constant 0 : index
    %c0_12 = arith.constant 0 : index
    %8 = vector.load %arg1[%c0_11, %c0_12] : memref<8x2xf32, #tpu.memory_space<vmem>>, vector<8x2xf32>
    %9 = vector.extract_strided_slice %8 {offsets = [0, 0], sizes = [8, 1], strides = [1, 1]} : vector<8x2xf32> to vector<8x1xf32>
    %10 = vector.extract_strided_slice %0 {offsets = [0, 0], sizes = [1, 128], strides = [1, 1]} : vector<2x128xf32> to vector<1x128xf32>
    %11 = vector.broadcast %9 : vector<8x1xf32> to vector<8x128xf32>
    %12 = vector.broadcast %10 : vector<1x128xf32> to vector<8x128xf32>
    %13 = arith.mulf %11, %12 : vector<8x128xf32>
    %14 = arith.addf %7, %13 : vector<8x128xf32>
    %15 = vector.extract_strided_slice %8 {offsets = [0, 1], sizes = [8, 1], strides = [1, 1]} : vector<8x2xf32> to vector<8x1xf32>
    %16 = vector.extract_strided_slice %0 {offsets = [1, 0], sizes = [1, 128], strides = [1, 1]} : vector<2x128xf32> to vector<1x128xf32>
    %17 = vector.broadcast %15 : vector<8x1xf32> to vector<8x128xf32>
    %18 = vector.broadcast %16 : vector<1x128xf32> to vector<8x128xf32>
    %19 = arith.mulf %17, %18 : vector<8x128xf32>
    %20 = arith.addf %14, %19 : vector<8x128xf32>
    %cst = arith.constant 0.000000e+00 : f32
    %21 = vector.broadcast %cst : f32 to vector<8x128xf32>
    %22 = arith.maximumf %20, %21 : vector<8x128xf32>
    %23 = arith.truncf %22 : vector<8x128xf32> to vector<8x128xbf16>
    %cst_13 = arith.constant dense<0.000000e+00> : vector<8x128xf32>
    %24 = tpu.matmul %23, %1, %cst_13 {dimension_numbers = #tpu.dot_dimension_numbers<[1], [0], [0], [1], [0, 0, 1, 1], [], []>} : vector<8x128xbf16>, vector<128x128xbf16>, vector<8x128xf32> -> vector<8x128xf32>
    %25 = vector.broadcast %2 : vector<1x128xf32> to vector<8x128xf32>
    %26 = arith.addf %24, %25 : vector<8x128xf32>
    %cst_14 = arith.constant 0.000000e+00 : f32
    %27 = vector.broadcast %cst_14 : f32 to vector<8x128xf32>
    %28 = arith.maximumf %26, %27 : vector<8x128xf32>
    %29 = arith.truncf %28 : vector<8x128xf32> to vector<8x128xbf16>
    %cst_15 = arith.constant dense<0.000000e+00> : vector<8x64xf32>
    %30 = tpu.matmul %29, %3, %cst_15 {dimension_numbers = #tpu.dot_dimension_numbers<[1], [0], [0], [1], [0, 0, 1, 1], [], []>} : vector<8x128xbf16>, vector<128x64xbf16>, vector<8x64xf32> -> vector<8x64xf32>
    %31 = vector.broadcast %4 : vector<1x64xf32> to vector<8x64xf32>
    %32 = arith.addf %30, %31 : vector<8x64xf32>
    %33 = arith.negf %32 : vector<8x64xf32>
    %34 = math.exp %33 : vector<8x64xf32>
    %cst_16 = arith.constant 1.000000e+00 : f32
    %35 = vector.broadcast %cst_16 : f32 to vector<8x64xf32>
    %36 = arith.addf %35, %34 : vector<8x64xf32>
    %37 = arith.divf %35, %36 : vector<8x64xf32>
    %c0_17 = arith.constant 0 : index
    %c0_18 = arith.constant 0 : index
    %38 = vector.load %arg8[%c0_17, %c0_18] : memref<8x64xf32, #tpu.memory_space<vmem>>, vector<8x64xf32>
    tpu.vector_store %arg8[%c0_17, %c0_18], %37 {strides = array<i32>} : memref<8x64xf32, #tpu.memory_space<vmem>>, vector<8x64xf32>,
    return
  }
  func.func @transform_0(%arg0: i32) -> (i32, i32) {
    %c0_i32 = arith.constant 0 : i32
    %c0_i32_0 = arith.constant 0 : i32
    return %arg0, %c0_i32 : i32, i32
  }
  func.func @transform_1(%arg0: i32) -> (i32, i32) {
    %c0_i32 = arith.constant 0 : i32
    %c0_i32_0 = arith.constant 0 : i32
    %c0_i32_1 = arith.constant 0 : i32
    return %c0_i32, %c0_i32_0 : i32, i32
  }
  func.func @transform_2(%arg0: i32) -> (i32, i32) {
    %c0_i32 = arith.constant 0 : i32
    %c0_i32_0 = arith.constant 0 : i32
    %c0_i32_1 = arith.constant 0 : i32
    return %c0_i32, %c0_i32_0 : i32, i32
  }
  func.func @transform_3(%arg0: i32) -> (i32, i32) {
    %c0_i32 = arith.constant 0 : i32
    %c0_i32_0 = arith.constant 0 : i32
    %c0_i32_1 = arith.constant 0 : i32
    return %c0_i32, %c0_i32_0 : i32, i32
  }
  func.func @transform_4(%arg0: i32) -> (i32, i32) {
    %c0_i32 = arith.constant 0 : i32
    %c0_i32_0 = arith.constant 0 : i32
    %c0_i32_1 = arith.constant 0 : i32
    return %c0_i32, %c0_i32_0 : i32, i32
  }
  func.func @transform_5(%arg0: i32) -> (i32, i32) {
    %c0_i32 = arith.constant 0 : i32
    %c0_i32_0 = arith.constant 0 : i32
    %c0_i32_1 = arith.constant 0 : i32
    return %c0_i32, %c0_i32_0 : i32, i32
  }
  func.func @transform_6(%arg0: i32) -> (i32, i32) {
    %c0_i32 = arith.constant 0 : i32
    %c0_i32_0 = arith.constant 0 : i32
    %c0_i32_1 = arith.constant 0 : i32
    return %c0_i32, %c0_i32_0 : i32, i32
  }
  func.func @transform_7(%arg0: i32) -> (i32, i32) {
    %c0_i32 = arith.constant 0 : i32
    %c0_i32_0 = arith.constant 0 : i32
    return %arg0, %c0_i32 : i32, i32
  }
}

</mosaic_0001>

<bundles_post_ra>
// kernel: tpu_custom_call.1
= control target key start
LH: loop header
LB: loop body
LE: loop exit
PB: predicated region body
PF: predicated region fallthrough
CT: control target
= control target key end

     0   :  { %v435_v1 = vmov 0   ;;  %v436_v2 = vmov 0.0   ;;  %v437_v5 = vmov 1   ;;  %vm438_vm0 = vmmov 0   ;;  %s573_s0 = inlined_call_operand.vmem [shape: f32[8,2], index: 0, kind: input, shape index: {}]   ;;  %s574_s1 = inlined_call_operand.vmem [shape: f32[2,128], index: 1, kind: input, shape index: {}]   ;;  %s575_s2 = inlined_call_operand.vmem [shape: f32[1,128], index: 2, kind: input, shape index: {}]   ;;  %s576_s3 = inlined_call_operand.vmem [shape: bf16[128,128], index: 3, kind: input, shape index: {}]   ;;  %s577_s4 = inlined_call_operand.vmem [shape: f32[1,128], index: 4, kind: input, shape index: {}]   ;;  %s578_s5 = inlined_call_operand.vmem [shape: bf16[128,64], index: 5, kind: input, shape index: {}]   ;;  %s579_s6 = inlined_call_operand.vmem [shape: f32[1,64], index: 6, kind: input, shape index: {}]   ;;  %s580_s7 = inlined_call_operand.hbm [shape: f32[8,64], index: 7, kind: output, shape index: {}]  }
   0x1   :  { %v70_v0 = vld [vmem:[%s573_s0] sm:$0xff]  ;;  %389 = vset.pattern.permute.xlu0 %v435_v1  ;;  %344 = vmatprep.subr.bf16.mxu0 %v436_v2  ;;  %v392_v4 = vld [vmem:[%s576_s3 + $0x8] sm:$0xff]   ;;  %v393_v6 = vld [vmem:[%s576_s3 + $0x10] sm:$0xff]  }
   0x2   :  { %v391_v3 = vld [vmem:[%s576_s3] sm:$0xff]   ;;  %73 = vperm.xlu0 %389, %v70_v0   ;;  %364 = vmatprep.subr.bf16.mxu1 %v436_v2  ;;  %v394_v7 = vld [vmem:[%s576_s3 + $0x18] sm:$0xff]   ;;  %v400_v10 = vld [vmem:[%s578_s5 + $0x8] sm:$0xff]  }
   0x3   :  { %345 = vmatpush3.bf16.msra.mxu0 %v391_v3  ;;  %360 = vmatprep.mubr.msk.bf16.mxu0 %vm438_vm0, %v436_v2  ;;  %v395_v8 = vld [vmem:[%s576_s3 + $0x20] sm:$0xff]  }
   0x4   :  { %346 = vmatprep.subr.bf16.mxu0 %v436_v2  ;;  %380 = vmatprep.mubr.msk.bf16.mxu1 %vm438_vm0, %v436_v2  ;;  %v399_v9 = vld [vmem:[%s578_s5] sm:$0xff]  }
   0x5   :  { %365 = vmatpush3.bf16.msra.mxu1 %v399_v9 }
   0x6   :  { %390 = vset.pattern.permute.xlu0 %v437_v5 }
   0x7   :  { %83 = vperm.xlu0 %390, %v70_v0   ;;  %347 = vmatpush3.bf16.msra.mxu0 %v392_v4 }
   0x8   :  { %348 = vmatprep.subr.bf16.mxu0 %v436_v2 }
   0xb   :  { %349 = vmatpush3.bf16.msra.mxu0 %v393_v6 }
   0xc   :  { %350 = vmatprep.subr.bf16.mxu0 %v436_v2 }
   0xf   :  { %351 = vmatpush3.bf16.msra.mxu0 %v394_v7 }
  0x10   :  { %352 = vmatprep.subr.bf16.mxu0 %v436_v2 }
  0x11   :  { %12 = vsyncpa [#allocation3], 0  ;;  %366 = vmatprep.subr.bf16.mxu1 %v436_v2  ;;  %v396_v11 = vld [vmem:[%s576_s3 + $0x28] sm:$0xff]   ;;  %v401_v12 = vld [vmem:[%s578_s5 + $0x10] sm:$0xff]   ;;  %v76_v18 = vlaneseq  ;;  %vm290_vm1 = vcmask 523264  }
  0x12   :  { %367 = vmatpush3.bf16.msra.mxu1 %v400_v10  ;;  %v397_v13 = vld [vmem:[%s576_s3 + $0x30] sm:$0xff]   ;;  %v402_v14 = vld [vmem:[%s578_s5 + $0x18] sm:$0xff]   ;;  %v403_v16 = vld [vmem:[%s578_s5 + $0x20] sm:$0xff]  }
  0x13   :  { %353 = vmatpush3.bf16.msra.mxu0 %v395_v8  ;;  %368 = vmatprep.subr.bf16.mxu1 %v436_v2  ;;  %v398_v15 = vld [vmem:[%s576_s3 + $0x38] sm:$0xff]   ;;  %v404_v17 = vld [vmem:[%s578_s5 + $0x28] sm:$0xff]   ;;  %v77_v19 = vshrl.u32 %v76_v18, 7  ;;  %v28_v21 = vld [vmem:[%s574_s1] sm:$0x3] }
  0x14   :  { %354 = vmatprep.subr.bf16.mxu0 %v436_v2  ;;  %v306_v27 = vld [vmem:[%s575_s2] ss:$0 sm:$0xff]  ;;  %v405_v34 = vld [vmem:[%s578_s5 + $0x30] sm:$0xff]   ;;  %v406_v35 = vld [vmem:[%s578_s5 + $0x38] sm:$0xff]  }
  0x15   :  { %v78_v20 = vsub.s32 0, %v77_v19  ;;  %v88_v23 = vsub.s32 1, %v77_v19  ;;  %v307_v36 = vld [vmem:[%s577_s4] ss:$0 sm:$0xff]  ;;  %s439_s4 = smov [#allocation2]  }
  0x16   :  { %369 = vmatpush3.bf16.msra.mxu1 %v401_v12  ;;  %v316_v44 = vld [vmem:[%s579_s6] ss:$0 sm:$0xff]  ;;  %s298_s5 = sshll.u32 %s439_s4, 4  ;;  %s299_s5 = int_to_ptr.vmem [resolvable:$true] %s298_s5 }
  0x17   :  { %355 = vmatpush3.bf16.msra.mxu0 %v396_v11  ;;  %370 = vmatprep.subr.bf16.mxu1 %v436_v2  ;;  %v79_v22 = vrot.slane %v28_v21, %v78_v20  ;;  %v89_v26 = vrot.slane %v28_v21, %v88_v23  ;;  %s411_s15 = scalar_lea.vmem %s299_s5, 128  ;;  %p416_p1 = scmp.lt.s32.totalorder %s299_s5, %s299_s5 }
  0x18   :  { %356 = vmatprep.subr.bf16.mxu0 %v436_v2  ;;  %p412_p0 = scmp.ne.s32.totalorder %s299_s5, %s411_s15  ;;  %p417_p2 = scmp.lt.s32.totalorder %s411_s15, %s411_s15 }
  0x1a   :  { %371 = vmatpush3.bf16.msra.mxu1 %v402_v14  ;;  %p418_p3 = por %p417_p2, %p416_p1 }
  0x1b   :  { %357 = vmatpush3.bf16.msra.mxu0 %v397_v13  ;;  %372 = vmatprep.subr.bf16.mxu1 %v436_v2 }
  0x1c   :  { %358 = vmatprep.subr.bf16.mxu0 %v436_v2  ;;  %p419_p4 = pnand %p418_p3, %p412_p0 }
  0x1e   :  { %373 = vmatpush3.bf16.msra.mxu1 %v403_v16 }
  0x1f   :  { %359 = vmatpush3.bf16.msra.mxu0 %v398_v15  ;;  %374 = vmatprep.subr.bf16.mxu1 %v436_v2 }
  0x22   :  { %375 = vmatpush3.bf16.msra.mxu1 %v404_v17 }
  0x23   :  { %376 = vmatprep.subr.bf16.mxu1 %v436_v2 }
  0x26   :  { %377 = vmatpush3.bf16.msra.mxu1 %v405_v34 }
  0x27   :  { %378 = vmatprep.subr.bf16.mxu1 %v436_v2 }
  0x2a   :  { %379 = vmatpush3.bf16.msra.mxu1 %v406_v35 }
  0x81   :  { %v74_v24 = vpop.permute.xlu0 %73 }
  0x82   :  { %v80_v25 = vmul.f32 %v79_v22, %v74_v24 }
  0x84   :  { %v81_v29 = vadd.f32 %v306_v27, %v80_v25 }
  0x86   :  { %v84_v28 = vpop.permute.xlu0 %83 }
  0x87   :  { %v90_v30 = vmul.f32 %v89_v26, %v84_v28 }
  0x89   :  { %v91_v31 = vadd.f32 %v90_v30, %v81_v29 }
  0x8b   :  { %v92_v32 = vmax.f32 %v91_v31, 0.0 }
  0x8d   :  { %v93_v33 = vpack.c.bf16 %v92_v32, %v92_v32 }
  0x8f   :  { %361 = vmatmul.mubr.bf16.vlgmr.msra.gmra.mrb[0].mxu0 %v93_v33 }
 0x162   :  { %v182_v37 = vpop.f32.mrb[0].mxu0 }
 0x163   :  { %v183_v38 = vadd.f32 %v307_v36, %v182_v37  ;;  %v362_v39 = vpop.f32.mrb[1].mxu0 }
 0x164   :  { %v185_v40 = vpop.f32.mrb[2].mxu0 }
 0x165   :  { %v188_v41 = vmax.f32 %v183_v38, 0.0  ;;  %v363_v42 = vpop.f32.mrb[3].mxu0 }
 0x167   :  { %v189_v43 = vpack.c.bf16 %v188_v41, %v188_v41 }
 0x169   :  { %381 = vmatmul.mubr.bf16.vlgmr.msra.gmra.mrb[0].mxu1 %v189_v43 }
 0x23c   :  { %v278_v45 = vpop.f32.mrb[0].mxu1 }
 0x23d   :  { %v279_v46 = vadd.f32 %v316_v44, %v278_v45  ;;  %v382_v47 = vpop.f32.mrb[1].mxu1 }
 0x23e   :  { %v281_v48 = vpop.f32.mrb[2].mxu1 }
 0x23f   :  { %v325_v49 = vmul.f32 -1.442695, %v279_v46  ;;  %v383_v50 = vpop.f32.mrb[3].mxu1 }
 0x241   :  { %407 = vpow2.f32 %v325_v49 }
 0x24b   :  { %v408_v51 = vpop.eup %407 }
 0x24c   :  { %v287_v52 = vadd.f32 1.0, %v408_v51 }
 0x24e   :  { %409 = vrcp.f32 %v287_v52 }
 0x258   :  { %v410_v53 = vpop.eup %409 }
 0x259   :  { %291 = vst.msk [vmem:[#allocation2] sm:$0xff] %vm290_vm1, %v410_v53 }
 0x25a   :  { %422 = shalt.err (!%p419_p4)
}
 0x25b   :  { %s423_s17 = scalar_lea.hbm %s580_s7, 128 }
 0x25c   :  { %p424_p5 = scmp.ne.s32.totalorder %s580_s7, %s423_s17  ;;  %p427_p6 = scmp.lt.u32.totalorder %s423_s17, %s580_s7 }
 0x25e   :  { %p429_p7 = pnand %p427_p6, %p424_p5 }
 0x260   :  { %432 = shalt.err (!%p429_p7)
}
 0x261   :  { %301 = dma.vmem_to_hbm [thread:$0]  %s299_s5, 128, %s580_s7, [#allocation3]  }
 0x262   :  { %433 = dma.done.wait [#allocation3], 128  }
 0x263   :  { %434 = vsyncadd [#allocation3], 4294967168 }
 0x264   :  { %305 = vsyncpa [#allocation3], 1 }

</bundles_post_ra>
